<compile_context>
chip_gen: v6e
topology: v6e:2x2x1
jax: 0.10.0
libtpu: 0.0.40
codegen_flags: <defaults>
</compile_context>

<pallas_src>
import functools

import jax
import jax.numpy as jnp
from jax.experimental import pallas as pl
from jax.experimental.pallas import tpu as pltpu


# ----------------------------- kernels ------------------------------------ #

def _linear_kernel_single_k(x_ref, wt_ref, b_ref, o_ref):
    # Whole K fits in one tile: straight dot + bias, no accumulator, 2-D grid.
    o_ref[...] = (
        jnp.dot(x_ref[...], wt_ref[...], preferred_element_type=jnp.float32)
        + b_ref[...].astype(jnp.float32)
    ).astype(o_ref.dtype)


def _linear_kernel_acc_out(x_ref, wt_ref, b_ref, o_ref):
    # f32 output: accumulate directly into the resident output tile.
    k = pl.program_id(2)

    @pl.when(k == 0)
    def _():
        o_ref[...] = jnp.broadcast_to(b_ref[...], o_ref.shape).astype(o_ref.dtype)

    o_ref[...] += jnp.dot(
        x_ref[...], wt_ref[...], preferred_element_type=jnp.float32
    ).astype(o_ref.dtype)


def _linear_kernel_acc_scratch(x_ref, wt_ref, b_ref, o_ref, acc_ref):
    # Non-f32 output fallback: f32 VMEM accumulator + cast in the epilogue.
    k = pl.program_id(2)

    @pl.when(k == 0)
    def _():
        acc_ref[...] = jnp.broadcast_to(b_ref[...], acc_ref.shape).astype(jnp.float32)

    acc_ref[...] += jnp.dot(
        x_ref[...], wt_ref[...], preferred_element_type=jnp.float32
    )

    @pl.when(k == pl.num_programs(2) - 1)
    def _():
        o_ref[...] = acc_ref[...].astype(o_ref.dtype)


# ----------------------------- helpers ------------------------------------ #

def _round_up(x, m):
    return ((x + m - 1) // m) * m


def _pick_tile(dim_pad, cap, align):
    """Largest multiple of `align` that divides dim_pad and is <= cap."""
    cap = min(cap, dim_pad)
    best = align
    t = align
    while t <= cap:
        if dim_pad % t == 0:
            best = t
        t += align
    return best


def _linear_forward_padded(x, wt_p, b_p, d_out):
    """y = x @ wt_p + b_p (padded layouts), sliced back to (batch, d_out)."""
    batch, d_in = x.shape
    k_pad, n_pad = wt_p.shape
    dt_bytes = jnp.dtype(x.dtype).itemsize

    # Pad only to the (8, 128) hardware minimum (K already padded in wt_p).
    m_pad = _round_up(batch, 8)

    # Tiles: divide the padded dims exactly (no wasted MXU/DMA work), large
    # caps to amortize per-grid-step overhead, budgeted for v7x VMEM.
    tm = _pick_tile(m_pad, 512, 8)
    tn = _pick_tile(n_pad, 512, 128)
    tk = _pick_tile(k_pad, 2048, 128)

    # Dual-TensorCore (v7x): guarantee >=2 blocks on a parallel axis if dims allow.
    if (m_pad // tm) * (n_pad // tn) < 2:
        if n_pad // 128 >= 2:
            tn = _pick_tile(n_pad, n_pad // 2, 128)
        elif m_pad // 8 >= 2:
            tm = _pick_tile(m_pad, m_pad // 2, 8)

    # Pad activations (zeros in K contribute nothing; extra M rows sliced off).
    if m_pad != batch or k_pad != d_in:
        x_p = jnp.pad(x, ((0, m_pad - batch), (0, k_pad - d_in)))
    else:
        x_p = x

    m_blocks, n_blocks, k_blocks = m_pad // tm, n_pad // tn, k_pad // tk

    # VMEM footprint (double-buffered in/out) -> explicit scoped-VMEM limit.
    vmem_bytes = 2 * (tm * tk + tk * tn + tn + tm * tn) * dt_bytes
    vmem_limit = int(min(max(vmem_bytes + (8 << 20), 32 << 20), 48 << 20))

    cost = pl.CostEstimate(
        flops=2 * m_pad * n_pad * k_pad,
        bytes_accessed=dt_bytes * (m_pad * k_pad + k_pad * n_pad + n_pad + m_pad * n_pad),
        transcendentals=0,
    )

    if k_blocks == 1:
        # Specialized single-K path: 2-D grid, no accumulator, no pl.when.
        grid_spec = pltpu.PrefetchScalarGridSpec(
            num_scalar_prefetch=0,
            grid=(m_blocks, n_blocks),
            in_specs=[
                pl.BlockSpec((tm, tk), lambda i, j: (i, 0)),   # x tile
                pl.BlockSpec((tk, tn), lambda i, j: (0, j)),   # W.T tile
                pl.BlockSpec((1, tn), lambda i, j: (0, j)),    # bias tile
            ],
            out_specs=pl.BlockSpec((tm, tn), lambda i, j: (i, j)),
        )
        kernel = _linear_kernel_single_k
        semantics = ("parallel", "parallel")
    else:
        grid_spec_kwargs = dict(
            num_scalar_prefetch=0,
            grid=(m_blocks, n_blocks, k_blocks),
            in_specs=[
                pl.BlockSpec((tm, tk), lambda i, j, k: (i, k)),
                pl.BlockSpec((tk, tn), lambda i, j, k: (k, j)),
                pl.BlockSpec((1, tn), lambda i, j, k: (0, j)),
            ],
            out_specs=pl.BlockSpec((tm, tn), lambda i, j, k: (i, j)),
        )
        if x.dtype == jnp.float32:
            kernel = _linear_kernel_acc_out
        else:
            kernel = _linear_kernel_acc_scratch
            grid_spec_kwargs["scratch_shapes"] = [pltpu.VMEM((tm, tn), jnp.float32)]
        grid_spec = pltpu.PrefetchScalarGridSpec(**grid_spec_kwargs)
        semantics = ("parallel", "parallel", "arbitrary")

    y_p = pl.pallas_call(
        kernel,
        out_shape=jax.ShapeDtypeStruct((m_pad, n_pad), x.dtype),
        grid_spec=grid_spec,
        compiler_params=pltpu.CompilerParams(
            dimension_semantics=semantics,
            vmem_limit_bytes=vmem_limit,
        ),
        cost_estimate=cost,
    )(x_p, wt_p, b_p)

    return y_p[:batch, :d_out]


# --------------------------- module wrapper -------------------------------- #

class PallasLinear:
    """nn.Linear equivalent with the weight pre-transposed/padded ONCE."""

    def __init__(self, weight, bias, *, cast_bf16=False):
        d_out, d_in = weight.shape
        self.d_in, self.d_out = d_in, d_out
        k_pad = _round_up(d_in, 128)
        n_pad = _round_up(d_out, 128)

        wt = weight.T  # (d_in, d_out) lane-dense MXU RHS, done once here.
        wt_p = jnp.pad(wt, ((0, k_pad - d_in), (0, n_pad - d_out)))
        b_p = jnp.pad(bias, (0, n_pad - d_out)).reshape(1, n_pad)
        if cast_bf16:
            # TODO(synk): bf16 MXU path trades ~1e-2 accuracy for ~3x MXU
            # throughput on v6e/v7x; off by default to match the f32 reference.
            wt_p = wt_p.astype(jnp.bfloat16)
        self.wt_p = wt_p
        self.b_p = b_p

        self._fwd = jax.jit(
            functools.partial(_linear_forward_padded, d_out=self.d_out)
        )

    def __call__(self, x):
        return self._fwd(x, self.wt_p, self.b_p)


# ------------------------------- demo -------------------------------------- #

if __name__ == "__main__":
    key = jax.random.PRNGKey(0)

    # ---- Shapes from the PyTorch module defaults: Linear(d_in=2, d_out=1) ----
    d_in, d_out, batch = 2, 1, 8
    kx, kw, kb, k2x, k2w, k2b = jax.random.split(key, 6)

    bound = 1.0 / jnp.sqrt(jnp.float32(d_in))
    weight = jax.random.uniform(kw, (d_out, d_in), jnp.float32, -bound, bound)
    bias = jax.random.uniform(kb, (d_out,), jnp.float32, -bound, bound)
    x = jax.random.normal(kx, (batch, d_in), jnp.float32)

    lin = PallasLinear(weight, bias)
    y = lin(x)
    jax.block_until_ready(y)

    y_ref = x @ weight.T + bias
    assert y.shape == (batch, d_out)
    assert jnp.allclose(y, y_ref, atol=2e-5, rtol=2e-5)

    # ---- A second, awkwardly-shaped case to exercise padding / N-splitting ----
    d_in2, d_out2, batch2 = 200, 130, 37
    bound2 = 1.0 / jnp.sqrt(jnp.float32(d_in2))
    weight2 = jax.random.uniform(k2w, (d_out2, d_in2), jnp.float32, -bound2, bound2)
    bias2 = jax.random.uniform(k2b, (d_out2,), jnp.float32, -bound2, bound2)
    x2 = jax.random.normal(k2x, (batch2, d_in2), jnp.float32)

    lin2 = PallasLinear(weight2, bias2)
    y2 = lin2(x2)
    jax.block_until_ready(y2)

    y2_ref = x2 @ weight2.T + bias2
    assert y2.shape == (batch2, d_out2)
    assert jnp.allclose(y2, y2_ref, atol=1e-4, rtol=1e-4)

    print("KERNEL_OK")
</pallas_src>

<mosaic_0001>
module attributes {stable_mosaic.version = 11 : i64} {
  func.func @_linear_kernel_single_k(%arg0: i32, %arg1: i32, %arg2: memref<8x128xf32, #tpu.memory_space<vmem>>, %arg3: memref<128x128xf32, #tpu.memory_space<vmem>>, %arg4: memref<1x128xf32, #tpu.memory_space<vmem>>, %arg5: memref<8x128xf32, #tpu.memory_space<vmem>>) attributes {dimension_semantics = [#tpu.dimension_semantics<parallel>, #tpu.dimension_semantics<parallel>], iteration_bounds = array<i64: 1, 1>, scalar_prefetch = 0 : i64, scratch_operands = 0 : i64, tpu.core_type = #tpu.core_type<tc>, window_params = [{transform_indices = @transform_0, window_bounds = array<i64: 8, 128>}, {transform_indices = @transform_1, window_bounds = array<i64: 128, 128>}, {transform_indices = @transform_2, window_bounds = array<i64: 1, 128>}, {transform_indices = @transform_3, window_bounds = array<i64: 8, 128>}]} {
    %c0 = arith.constant 0 : index
    %c0_0 = arith.constant 0 : index
    %0 = vector.load %arg2[%c0, %c0_0] : memref<8x128xf32, #tpu.memory_space<vmem>>, vector<8x128xf32>
    %c0_1 = arith.constant 0 : index
    %c0_2 = arith.constant 0 : index
    %1 = vector.load %arg3[%c0_1, %c0_2] : memref<128x128xf32, #tpu.memory_space<vmem>>, vector<128x128xf32>
    %cst = arith.constant dense<0.000000e+00> : vector<8x128xf32>
    %2 = tpu.matmul %0, %1, %cst {dimension_numbers = #tpu.dot_dimension_numbers<[1], [0], [0], [1], [0, 0, 1, 1], [], []>} : vector<8x128xf32>, vector<128x128xf32>, vector<8x128xf32> -> vector<8x128xf32>
    %c0_3 = arith.constant 0 : index
    %c0_4 = arith.constant 0 : index
    %3 = vector.load %arg4[%c0_3, %c0_4] : memref<1x128xf32, #tpu.memory_space<vmem>>, vector<1x128xf32>
    %4 = vector.broadcast %3 : vector<1x128xf32> to vector<8x128xf32>
    %5 = arith.addf %2, %4 : vector<8x128xf32>
    %c0_5 = arith.constant 0 : index
    %c0_6 = arith.constant 0 : index
    %6 = vector.load %arg5[%c0_5, %c0_6] : memref<8x128xf32, #tpu.memory_space<vmem>>, vector<8x128xf32>
    tpu.vector_store %arg5[%c0_5, %c0_6], %5 {strides = array<i32>} : memref<8x128xf32, #tpu.memory_space<vmem>>, vector<8x128xf32>,
    return
  }
  func.func @transform_0(%arg0: i32, %arg1: i32) -> (i32, i32) {
    %c0_i32 = arith.constant 0 : i32
    %c0_i32_0 = arith.constant 0 : i32
    return %arg0, %c0_i32 : i32, i32
  }
  func.func @transform_1(%arg0: i32, %arg1: i32) -> (i32, i32) {
    %c0_i32 = arith.constant 0 : i32
    %c0_i32_0 = arith.constant 0 : i32
    return %c0_i32, %arg1 : i32, i32
  }
  func.func @transform_2(%arg0: i32, %arg1: i32) -> (i32, i32) {
    %c0_i32 = arith.constant 0 : i32
    %c0_i32_0 = arith.constant 0 : i32
    return %c0_i32, %arg1 : i32, i32
  }
  func.func @transform_3(%arg0: i32, %arg1: i32) -> (i32, i32) {
    %c0_i32 = arith.constant 0 : i32
    return %arg0, %arg1 : i32, i32
  }
}

</mosaic_0001>

<bundles_post_ra>
// kernel: _linear_forward_padded.1
= control target key start
LH: loop header
LB: loop body
LE: loop exit
PB: predicated region body
PF: predicated region fallthrough
CT: control target
= control target key end

     0   :  { %8 = vsyncpa [#allocation3], 0  ;;  %s208_s12 = smov [#allocation2]   ;;  %s245_s0 = inlined_call_operand.vmem [shape: f32[8,128], index: 0, kind: input, shape index: {}]   ;;  %s246_s1 = inlined_call_operand.hbm [shape: f32[128,128], index: 1, kind: input, shape index: {}]   ;;  %s247_s2 = inlined_call_operand.vmem [shape: f32[1,128], index: 2, kind: input, shape index: {}]   ;;  %s248_s3 = inlined_call_operand.vmem [shape: f32[8,128], index: 3, kind: output, shape index: {}]  }
   0x1   :  { %s16_s13 = sshll.u32 %s208_s12, 4  ;;  %s17_s13 = int_to_ptr.vmem [resolvable:$true] %s16_s13 }
   0x2   :  { %s194_s14 = scalar_lea.vmem %s17_s13, 2048  ;;  %p199_p1 = scmp.lt.s32.totalorder %s17_s13, %s17_s13 }
   0x3   :  { %p195_p0 = scmp.ne.s32.totalorder %s17_s13, %s194_s14  ;;  %p200_p2 = scmp.lt.s32.totalorder %s194_s14, %s194_s14 }
   0x5   :  { %p201_p3 = por %p200_p2, %p199_p1 }
   0x7   :  { %p202_p4 = pnand %p201_p3, %p195_p0 }
   0x9   :  { %205 = shalt.err (!%p202_p4)
}
   0xa   :  { %s209_s15 = smov 128   ;;  %s210_s16 = smov 8  }
   0xb   :  { %22 = dma.hbm_to_vmem [thread:$0]  %s246_s1, 2048, %s17_s13, [#allocation3], %s209_s15, %s209_s15, %s210_s16  }
   0xc   :  { %206 = dma.done.wait [#allocation3], 2048  }
   0xd   :  { %207 = vsyncadd [#allocation3], 4294965248  ;;  %v211_v0 = vmov 0.0   ;;  %vm212_vm0 = vmmov 0   ;;  %v44_v1 = vld [vmem:[#allocation2 + $0x78] sm:$0xff]  ;;  %v43_v2 = vld [vmem:[#allocation2 + $0x70] sm:$0xff] }
   0xe   :  { %146 = vmatprep.subr.mxu0 %v211_v0  ;;  %178 = vmatprep.mubr.msk.f32.mxu0 %vm212_vm0, %v211_v0  ;;  %v42_v3 = vld [vmem:[#allocation2 + $0x68] sm:$0xff]  ;;  %v41_v4 = vld [vmem:[#allocation2 + $0x60] sm:$0xff]  ;;  %v40_v5 = vld [vmem:[#allocation2 + $0x58] sm:$0xff] }
   0xf   :  { %147 = vmatpush3.msra.mxu0 %v44_v1  ;;  %v39_v6 = vld [vmem:[#allocation2 + $0x50] sm:$0xff]  ;;  %v38_v7 = vld [vmem:[#allocation2 + $0x48] sm:$0xff]  ;;  %v37_v8 = vld [vmem:[#allocation2 + $0x40] sm:$0xff] }
  0x10   :  { %148 = vmatprep.subr.mxu0 %v211_v0  ;;  %v36_v9 = vld [vmem:[#allocation2 + $0x38] sm:$0xff]  ;;  %v35_v10 = vld [vmem:[#allocation2 + $0x30] sm:$0xff]  ;;  %v34_v11 = vld [vmem:[#allocation2 + $0x28] sm:$0xff] }
  0x11   :  { %149 = vmatpush3.msra.mxu0 %v43_v2  ;;  %v33_v12 = vld [vmem:[#allocation2 + $0x20] sm:$0xff]  ;;  %v32_v13 = vld [vmem:[#allocation2 + $0x18] sm:$0xff]  ;;  %v31_v14 = vld [vmem:[#allocation2 + $0x10] sm:$0xff] }
  0x12   :  { %150 = vmatprep.subr.mxu0 %v211_v0  ;;  %v30_v15 = vld [vmem:[#allocation2 + $0x8] sm:$0xff]  ;;  %v29_v16 = vld [vmem:[#allocation2] sm:$0xff] }
  0x13   :  { %151 = vmatpush3.msra.mxu0 %v42_v3  ;;  %v28_v17 = vld [vmem:[%s245_s0] sm:$0xff] }
  0x14   :  { %152 = vmatprep.subr.mxu0 %v211_v0  ;;  %v128_v18 = vld [vmem:[%s247_s2] ss:$0 sm:$0xff] }
  0x15   :  { %153 = vmatpush3.msra.mxu0 %v41_v4 }
  0x16   :  { %154 = vmatprep.subr.mxu0 %v211_v0 }
  0x17   :  { %155 = vmatpush3.msra.mxu0 %v40_v5 }
  0x18   :  { %156 = vmatprep.subr.mxu0 %v211_v0 }
  0x19   :  { %157 = vmatpush3.msra.mxu0 %v39_v6 }
  0x1a   :  { %158 = vmatprep.subr.mxu0 %v211_v0 }
  0x1b   :  { %159 = vmatpush3.msra.mxu0 %v38_v7 }
  0x1c   :  { %160 = vmatprep.subr.mxu0 %v211_v0 }
  0x1d   :  { %161 = vmatpush3.msra.mxu0 %v37_v8 }
  0x1e   :  { %162 = vmatprep.subr.mxu0 %v211_v0 }
  0x1f   :  { %163 = vmatpush3.msra.mxu0 %v36_v9 }
  0x20   :  { %164 = vmatprep.subr.mxu0 %v211_v0 }
  0x21   :  { %165 = vmatpush3.msra.mxu0 %v35_v10 }
  0x22   :  { %166 = vmatprep.subr.mxu0 %v211_v0 }
  0x23   :  { %167 = vmatpush3.msra.mxu0 %v34_v11 }
  0x24   :  { %168 = vmatprep.subr.mxu0 %v211_v0 }
  0x25   :  { %169 = vmatpush3.msra.mxu0 %v33_v12 }
  0x26   :  { %170 = vmatprep.subr.mxu0 %v211_v0 }
  0x27   :  { %171 = vmatpush3.msra.mxu0 %v32_v13 }
  0x28   :  { %172 = vmatprep.subr.mxu0 %v211_v0 }
  0x29   :  { %173 = vmatpush3.msra.mxu0 %v31_v14 }
  0x2a   :  { %174 = vmatprep.subr.mxu0 %v211_v0 }
  0x2b   :  { %175 = vmatpush3.msra.mxu0 %v30_v15 }
  0x2c   :  { %176 = vmatprep.subr.mxu0 %v211_v0 }
  0x2d   :  { %177 = vmatpush3.msra.mxu0 %v29_v16 }
  0x2e   :  { %179 = vmatmul.mubr.f32.vlgmr.msra.gmra.mxu0 %v28_v17 }
  0xee   :  { %v118_v19 = vpop.f32.mrf.mxu0 }
  0xef   :  { %v119_v20 = vadd.f32 %v128_v18, %v118_v19 }
  0xf0   :  { %v180_v21 = vpop.f32.mrf.mxu0 }
  0xf1   :  { %122 = vst [vmem:[%s248_s3] sm:$0xff] %v119_v20 }
  0xf2   :  { %127 = vsyncpa [#allocation3], 1 }

</bundles_post_ra>
